<compile_context>
chip_gen: v7x
topology: tpu7x:2x2x1
jax: 0.10.0
libtpu: 0.0.40
codegen_flags: <defaults>
</compile_context>

<pallas_src>
import jax
import jax.numpy as jnp
from jax.experimental import pallas as pl
from jax.experimental.pallas import tpu as pltpu

INPUT_SIZE = 10   # seq_length
HIDDEN_SIZE = 64
OUTPUT_SIZE = 1
PAD_OUT = 128     # lane-dense padded output width


def mlp_kernel(x_ref, w1_ref, b1_ref, w2_ref, b2_ref, o_ref):
    # Fused: relu(x @ W1 + b1) @ W2pad + b2pad, one VMEM-resident batch tile.
    x = x_ref[...]                                            # (TB, INPUT_SIZE)
    h = jnp.dot(x, w1_ref[...], preferred_element_type=jnp.float32)
    h = jnp.maximum(h + b1_ref[...], 0.0)                     # (TB, HIDDEN_SIZE)
    y = jnp.dot(h, w2_ref[...], preferred_element_type=jnp.float32)
    o_ref[...] = (y + b2_ref[...]).astype(o_ref.dtype)        # (TB, PAD_OUT), unmasked store


def simple_nn_forward(x, w1, b1, w2, b2, tb=256):
    """x: (B, INPUT_SIZE); w1: (IN, H); b1: (1, H); w2: (H, OUT); b2: (1, OUT)."""
    B = x.shape[0]

    # Batch tile: multiple of 8, at most `tb`, at least 8.
    TB = min(tb, max(8, ((B + 7) // 8) * 8))
    Bp = pl.cdiv(B, TB) * TB
    if Bp != B:
        x = jnp.pad(x, ((0, Bp - B), (0, 0)))

    # Lane-dense output: zero-pad the output feature dim to 128.
    w2p = jnp.pad(w2, ((0, 0), (0, PAD_OUT - OUTPUT_SIZE)))
    b2p = jnp.pad(b2, ((0, 0), (0, PAD_OUT - OUTPUT_SIZE)))

    out = pl.pallas_call(
        mlp_kernel,
        out_shape=jax.ShapeDtypeStruct((Bp, PAD_OUT), x.dtype),
        grid_spec=pl.GridSpec(
            grid=(Bp // TB,),
            in_specs=[
                pl.BlockSpec((TB, INPUT_SIZE), lambda i: (i, 0)),      # x: tiled over batch
                pl.BlockSpec((INPUT_SIZE, HIDDEN_SIZE), lambda i: (0, 0)),  # W1: resident
                pl.BlockSpec((1, HIDDEN_SIZE), lambda i: (0, 0)),      # b1: resident
                pl.BlockSpec((HIDDEN_SIZE, PAD_OUT), lambda i: (0, 0)),  # W2 (padded): resident
                pl.BlockSpec((1, PAD_OUT), lambda i: (0, 0)),          # b2 (padded): resident
            ],
            out_specs=pl.BlockSpec((TB, PAD_OUT), lambda i: (i, 0)),
        ),
        compiler_params=pltpu.CompilerParams(
            dimension_semantics=("parallel",),   # shard batch tiles across TCs (v7x)
        ),
    )(x, w1, b1, w2p, b2p)

    # Slice back to the real batch and real output width.
    return out[:B, :OUTPUT_SIZE]


def init_params(key):
    # Deterministic init mimicking PyTorch nn.Linear: U(-1/sqrt(fan_in), 1/sqrt(fan_in)).
    k1, k2, k3, k4 = jax.random.split(key, 4)
    bound1 = 1.0 / (INPUT_SIZE ** 0.5)
    bound2 = 1.0 / (HIDDEN_SIZE ** 0.5)
    w1 = jax.random.uniform(k1, (INPUT_SIZE, HIDDEN_SIZE), jnp.float32,
                            minval=-bound1, maxval=bound1)
    b1 = jax.random.uniform(k2, (1, HIDDEN_SIZE), jnp.float32,
                            minval=-bound1, maxval=bound1)
    w2 = jax.random.uniform(k3, (HIDDEN_SIZE, OUTPUT_SIZE), jnp.float32,
                            minval=-bound2, maxval=bound2)
    b2 = jax.random.uniform(k4, (1, OUTPUT_SIZE), jnp.float32,
                            minval=-bound2, maxval=bound2)
    return w1, b1, w2, b2


if __name__ == "__main__":
    key = jax.random.PRNGKey(0)
    kx, kp, kx2 = jax.random.split(key, 3)
    w1, b1, w2, b2 = init_params(kp)

    # Small case (single grid step).
    batch = 8
    x = jax.random.normal(kx, (batch, INPUT_SIZE), jnp.float32)
    out = jax.block_until_ready(simple_nn_forward(x, w1, b1, w2, b2))
    ref = jnp.maximum(x @ w1 + b1, 0.0) @ w2 + b2
    assert out.shape == (batch, OUTPUT_SIZE)
    assert jnp.allclose(out, ref, atol=1e-5, rtol=1e-5)

    # Multi-tile case (exercises batch tiling + padding path), still small.
    batch2 = 70   # not a multiple of the tile -> exercises batch padding
    x2 = jax.random.normal(kx2, (batch2, INPUT_SIZE), jnp.float32)
    out2 = jax.block_until_ready(simple_nn_forward(x2, w1, b1, w2, b2, tb=16))
    ref2 = jnp.maximum(x2 @ w1 + b1, 0.0) @ w2 + b2
    assert out2.shape == (batch2, OUTPUT_SIZE)
    assert jnp.allclose(out2, ref2, atol=1e-5, rtol=1e-5)

    print("KERNEL_OK")
</pallas_src>

<mosaic_0001>
module attributes {stable_mosaic.version = 11 : i64} {
  func.func @mlp_kernel(%arg0: i32, %arg1: memref<8x10xf32, #tpu.memory_space<vmem>>, %arg2: memref<10x64xf32, #tpu.memory_space<vmem>>, %arg3: memref<1x64xf32, #tpu.memory_space<vmem>>, %arg4: memref<64x128xf32, #tpu.memory_space<vmem>>, %arg5: memref<1x128xf32, #tpu.memory_space<vmem>>, %arg6: memref<8x128xf32, #tpu.memory_space<vmem>>) attributes {dimension_semantics = [#tpu.dimension_semantics<parallel>], iteration_bounds = array<i64: 1>, scalar_prefetch = 0 : i64, scratch_operands = 0 : i64, tpu.core_type = #tpu.core_type<tc>, window_params = [{transform_indices = @transform_0, window_bounds = array<i64: 8, 10>}, {pipeline_mode = #tpu.pipeline_mode<synchronous>, transform_indices = @transform_1, window_bounds = array<i64: 10, 64>}, {pipeline_mode = #tpu.pipeline_mode<synchronous>, transform_indices = @transform_2, window_bounds = array<i64: 1, 64>}, {pipeline_mode = #tpu.pipeline_mode<synchronous>, transform_indices = @transform_3, window_bounds = array<i64: 64, 128>}, {pipeline_mode = #tpu.pipeline_mode<synchronous>, transform_indices = @transform_4, window_bounds = array<i64: 1, 128>}, {transform_indices = @transform_5, window_bounds = array<i64: 8, 128>}]} {
    %c0 = arith.constant 0 : index
    %c0_0 = arith.constant 0 : index
    %0 = vector.load %arg1[%c0, %c0_0] : memref<8x10xf32, #tpu.memory_space<vmem>>, vector<8x10xf32>
    %c0_1 = arith.constant 0 : index
    %c0_2 = arith.constant 0 : index
    %1 = vector.load %arg2[%c0_1, %c0_2] : memref<10x64xf32, #tpu.memory_space<vmem>>, vector<10x64xf32>
    %cst = arith.constant dense<0.000000e+00> : vector<8x64xf32>
    %2 = tpu.matmul %0, %1, %cst {dimension_numbers = #tpu.dot_dimension_numbers<[1], [0], [0], [1], [0, 0, 1, 1], [], []>} : vector<8x10xf32>, vector<10x64xf32>, vector<8x64xf32> -> vector<8x64xf32>
    %c0_3 = arith.constant 0 : index
    %c0_4 = arith.constant 0 : index
    %3 = vector.load %arg3[%c0_3, %c0_4] : memref<1x64xf32, #tpu.memory_space<vmem>>, vector<1x64xf32>
    %4 = vector.broadcast %3 : vector<1x64xf32> to vector<8x64xf32>
    %5 = arith.addf %2, %4 : vector<8x64xf32>
    %cst_5 = arith.constant 0.000000e+00 : f32
    %6 = vector.broadcast %cst_5 : f32 to vector<8x64xf32>
    %7 = arith.maximumf %5, %6 : vector<8x64xf32>
    %c0_6 = arith.constant 0 : index
    %c0_7 = arith.constant 0 : index
    %8 = vector.load %arg4[%c0_6, %c0_7] : memref<64x128xf32, #tpu.memory_space<vmem>>, vector<64x128xf32>
    %cst_8 = arith.constant dense<0.000000e+00> : vector<8x128xf32>
    %9 = tpu.matmul %7, %8, %cst_8 {dimension_numbers = #tpu.dot_dimension_numbers<[1], [0], [0], [1], [0, 0, 1, 1], [], []>} : vector<8x64xf32>, vector<64x128xf32>, vector<8x128xf32> -> vector<8x128xf32>
    %c0_9 = arith.constant 0 : index
    %c0_10 = arith.constant 0 : index
    %10 = vector.load %arg5[%c0_9, %c0_10] : memref<1x128xf32, #tpu.memory_space<vmem>>, vector<1x128xf32>
    %11 = vector.broadcast %10 : vector<1x128xf32> to vector<8x128xf32>
    %12 = arith.addf %9, %11 : vector<8x128xf32>
    %c0_11 = arith.constant 0 : index
    %c0_12 = arith.constant 0 : index
    %13 = vector.load %arg6[%c0_11, %c0_12] : memref<8x128xf32, #tpu.memory_space<vmem>>, vector<8x128xf32>
    tpu.vector_store %arg6[%c0_11, %c0_12], %12 {strides = array<i32>} : memref<8x128xf32, #tpu.memory_space<vmem>>, vector<8x128xf32>,
    return
  }
  func.func @transform_0(%arg0: i32) -> (i32, i32) {
    %c0_i32 = arith.constant 0 : i32
    %c0_i32_0 = arith.constant 0 : i32
    return %arg0, %c0_i32 : i32, i32
  }
  func.func @transform_1(%arg0: i32) -> (i32, i32) {
    %c0_i32 = arith.constant 0 : i32
    %c0_i32_0 = arith.constant 0 : i32
    %c0_i32_1 = arith.constant 0 : i32
    return %c0_i32, %c0_i32_0 : i32, i32
  }
  func.func @transform_2(%arg0: i32) -> (i32, i32) {
    %c0_i32 = arith.constant 0 : i32
    %c0_i32_0 = arith.constant 0 : i32
    %c0_i32_1 = arith.constant 0 : i32
    return %c0_i32, %c0_i32_0 : i32, i32
  }
  func.func @transform_3(%arg0: i32) -> (i32, i32) {
    %c0_i32 = arith.constant 0 : i32
    %c0_i32_0 = arith.constant 0 : i32
    %c0_i32_1 = arith.constant 0 : i32
    return %c0_i32, %c0_i32_0 : i32, i32
  }
  func.func @transform_4(%arg0: i32) -> (i32, i32) {
    %c0_i32 = arith.constant 0 : i32
    %c0_i32_0 = arith.constant 0 : i32
    %c0_i32_1 = arith.constant 0 : i32
    return %c0_i32, %c0_i32_0 : i32, i32
  }
  func.func @transform_5(%arg0: i32) -> (i32, i32) {
    %c0_i32 = arith.constant 0 : i32
    %c0_i32_0 = arith.constant 0 : i32
    return %arg0, %c0_i32 : i32, i32
  }
}

</mosaic_0001>

<bundles_post_ra>
// kernel: tpu_custom_call.1
= control target key start
LH: loop header
LB: loop body
LE: loop exit
PB: predicated region body
PF: predicated region fallthrough
CT: control target
= control target key end

     0   :  { %10 = vsyncpa [#allocation3], 0  ;;  %s518_s0 = inlined_call_operand.hbm [shape: f32[8,10], index: 0, kind: input, shape index: {}]   ;;  %s519_s1 = inlined_call_operand.hbm [shape: f32[10,64], index: 1, kind: input, shape index: {}]   ;;  %s520_s2 = inlined_call_operand.vmem [shape: f32[1,64], index: 2, kind: input, shape index: {}]   ;;  %s521_s3 = inlined_call_operand.hbm [shape: f32[64,128], index: 3, kind: input, shape index: {}]   ;;  %s522_s4 = inlined_call_operand.vmem [shape: f32[1,128], index: 4, kind: input, shape index: {}]   ;;  %s523_s5 = inlined_call_operand.hbm [shape: f32[8,128], index: 5, kind: output, shape index: {}]  }
   0x1   :  { %11 = vsyncpa [#allocation6], 0 }
   0x2   :  { %12 = vsyncpa [#allocation4], 0  ;;  %s418_s18 = smov [#allocation5]   ;;  %s324_s22 = scalar_lea.hbm %s519_s1, 256 }
   0x3   :  { %s28_s19 = sshll.u32 %s418_s18, 4  ;;  %p325_p0 = scmp.ne.s32.totalorder %s519_s1, %s324_s22  ;;  %s29_s19 = int_to_ptr.vmem [resolvable:$true] %s28_s19 }
   0x4   :  { %p328_p1 = scmp.lt.u32.totalorder %s324_s22, %s519_s1 }
   0x6   :  { %p330_p2 = pnand %p328_p1, %p325_p0 }
   0x8   :  { %333 = shalt.err (!%p330_p2)
}
   0x9   :  { %s334_s27 = scalar_lea.vmem %s29_s19, 256  ;;  %p339_p4 = scmp.lt.s32.totalorder %s29_s19, %s29_s19 }
   0xa   :  { %p335_p3 = scmp.ne.s32.totalorder %s29_s19, %s334_s27  ;;  %p340_p5 = scmp.lt.s32.totalorder %s334_s27, %s334_s27 }
   0xc   :  { %p341_p6 = por %p340_p5, %p339_p4 }
   0xe   :  { %p342_p7 = pnand %p341_p6, %p335_p3 }
  0x10   :  { %345 = shalt.err (!%p342_p7)
}
  0x11   :  { %s419_s28 = smov 128   ;;  %s420_s29 = smov 8  }
  0x12   :  { %34 = dma.hbm_to_vmem [thread:$0]  %s519_s1, 256, %s29_s19, [#allocation6], %s419_s28, %s419_s28, %s420_s29  }
  0x13   :  { %s421_s7 = smov [#allocation2]   ;;  %s422_s9 = smov [#allocation7]  }
  0x14   :  { %s19_s8 = sshll.u32 %s421_s7, 4  ;;  %s42_s10 = sshll.u32 %s422_s9, 4  ;;  %s20_s8 = int_to_ptr.vmem [resolvable:$true] %s19_s8  ;;  %s43_s10 = int_to_ptr.vmem [resolvable:$true] %s42_s10 }
  0x15   :  { %s346_s13 = scalar_lea.hbm %s518_s0, 128 }
  0x16   :  { %p347_p8 = scmp.ne.s32.totalorder %s518_s0, %s346_s13  ;;  %p350_p9 = scmp.lt.u32.totalorder %s346_s13, %s518_s0 }
  0x18   :  { %p352_p10 = pnand %p350_p9, %p347_p8 }
  0x1a   :  { %355 = shalt.err (!%p352_p10)
}
  0x1b   :  { %s356_s1 = scalar_lea.vmem %s20_s8, 128  ;;  %p361_p12 = scmp.lt.s32.totalorder %s20_s8, %s20_s8 }
  0x1c   :  { %p357_p11 = scmp.ne.s32.totalorder %s20_s8, %s356_s1  ;;  %p362_p13 = scmp.lt.s32.totalorder %s356_s1, %s356_s1 }
  0x1e   :  { %p363_p0 = por %p362_p13, %p361_p12 }
  0x20   :  { %p364_p1 = pnand %p363_p0, %p357_p11 }
  0x22   :  { %367 = shalt.err (!%p364_p1)
}
  0x23   :  { %22 = dma.hbm_to_vmem [thread:$0]  %s518_s0, 128, %s20_s8, [#allocation3]  }
  0x24   :  { %s368_s22 = scalar_lea.hbm %s521_s3, 1024 }
  0x25   :  { %p369_p2 = scmp.ne.s32.totalorder %s521_s3, %s368_s22  ;;  %p372_p3 = scmp.lt.u32.totalorder %s368_s22, %s521_s3 }
  0x27   :  { %p374_p4 = pnand %p372_p3, %p369_p2 }
  0x29   :  { %377 = shalt.err (!%p374_p4)
}
  0x2a   :  { %s378_s27 = scalar_lea.vmem %s43_s10, 1024  ;;  %p383_p6 = scmp.lt.s32.totalorder %s43_s10, %s43_s10 }
  0x2b   :  { %p379_p5 = scmp.ne.s32.totalorder %s43_s10, %s378_s27  ;;  %p384_p7 = scmp.lt.s32.totalorder %s378_s27, %s378_s27 }
  0x2d   :  { %p385_p8 = por %p384_p7, %p383_p6 }
  0x2f   :  { %p386_p9 = pnand %p385_p8, %p379_p5 }
  0x31   :  { %389 = shalt.err (!%p386_p9)
}
  0x32   :  { %48 = dma.hbm_to_vmem [thread:$0]  %s521_s3, 1024, %s43_s10, [#allocation6], %s419_s28, %s419_s28, %s420_s29  }
  0x33   :  { %412 = dma.done.wait [#allocation3], 128  }
  0x34   :  { %413 = vsyncadd [#allocation3], 4294967168 }
  0x35   :  { %414 = dma.done.wait [#allocation6], 1280  }
  0x36   :  { %415 = vsyncadd [#allocation6], 4294966016  ;;  %v423_v0 = vmov 0.0|0.0   ;;  %vm424_vm0 = vmmov 0   ;;  %v425_v1 = vmov 0.0   ;;  %vm74_vm1 = vcmask 1041408  }
  0x37   :  { %298 = vmatprep.subr.bf16.mxu0 %v423_v0  ;;  %302 = vmatprep.subr.bf16.mxu1 %v423_v0  ;;  %v61_v2 = vld [vmem:[#allocation5] sm:$0xff]  ;;  %v62_v3 = vld [vmem:[#allocation5 + $0x8] sm:$0x3]  ;;  %vm426_vm2 = vmmov 1   ;;  %v149_v5 = vld [vmem:[#allocation7] sm:$0xff]  ;;  %vm70_vm4 = vcmask 80896  }
  0x38   :  { %276 = vmatprep.mubr.msk.f32.mxu0 %vm424_vm0, %v425_v1  ;;  %295 = vmatprep.mubr.msk.f32.mxu1 %vm424_vm0, %v425_v1  ;;  %vm300_vm3 = vmpackc.low %vm74_vm1, %vm426_vm2  ;;  %v299_v4 = vpack.c.bf16 %v62_v3, %v61_v2  ;;  %v150_v6 = vld [vmem:[#allocation7 + $0x8] sm:$0xff]  ;;  %v151_v7 = vld [vmem:[#allocation7 + $0x10] sm:$0xff]  ;;  %vm164_vm5 = vcmask 523264   ;;  %s427_s7 = smov [#allocation8]  }
  0x39   :  { %v303_v8 = vpack.c.bf16 %v150_v6, %v149_v5  ;;  %v152_v9 = vld [vmem:[#allocation7 + $0x18] sm:$0xff]  ;;  %v60_v10 = vld [vmem:[#allocation2] sm:$0xff]  ;;  %v153_v12 = vld [vmem:[#allocation7 + $0x20] sm:$0xff]  ;;  %s245_s8 = sshll.u32 %s427_s7, 4  ;;  %s246_s8 = int_to_ptr.vmem [resolvable:$true] %s245_s8 }
  0x3a   :  { %301 = vmatpush3.bf16.msk.msra.mxu0 %vm300_vm3, %v299_v4  ;;  %v306_v11 = vpack.c.bf16 %v152_v9, %v151_v7  ;;  %v154_v13 = vld [vmem:[#allocation7 + $0x28] sm:$0xff]  ;;  %v155_v15 = vld [vmem:[#allocation7 + $0x30] sm:$0xff]  ;;  %v156_v16 = vld [vmem:[#allocation7 + $0x38] sm:$0xff]  ;;  %s390_s9 = scalar_lea.vmem %s246_s8, 128  ;;  %p395_p11 = scmp.lt.s32.totalorder %s246_s8, %s246_s8 }
  0x3b   :  { %304 = vmatpush3.bf16.msra.mxu1 %v303_v8  ;;  %v309_v14 = vpack.c.bf16 %v154_v13, %v153_v12  ;;  %v312_v17 = vpack.c.bf16 %v156_v16, %v155_v15  ;;  %v255_v18 = vld [vmem:[%s520_s2] ss:$0 sm:$0xff]  ;;  %p391_p10 = scmp.ne.s32.totalorder %s246_s8, %s390_s9  ;;  %p396_p12 = scmp.lt.s32.totalorder %s390_s9, %s390_s9 }
  0x3c   :  { %305 = vmatprep.subr.bf16.mxu1 %v423_v0  ;;  %v258_v23 = vld [vmem:[%s522_s4] ss:$0 sm:$0xff] }
  0x3d   :  { %277 = vmatmul.mubr.msk.f32.vlgmr.msra.gmra.mrb[0].mxu0 %vm70_vm4, %v60_v10  ;;  %p397_p13 = por %p396_p12, %p395_p11 }
  0x3f   :  { %307 = vmatpush3.bf16.msra.mxu1 %v306_v11  ;;  %p398_p0 = pnand %p397_p13, %p391_p10 }
  0x40   :  { %308 = vmatprep.subr.bf16.mxu1 %v423_v0 }
  0x43   :  { %310 = vmatpush3.bf16.msra.mxu1 %v309_v14 }
  0x44   :  { %311 = vmatprep.subr.bf16.mxu1 %v423_v0 }
  0x47   :  { %313 = vmatpush3.bf16.msra.mxu1 %v312_v17 }
 0x110   :  { %v144_v19 = vpop.f32.mrb[0].mxu0 }
 0x111   :  { %v145_v20 = vadd.f32 %v255_v18, %v144_v19  ;;  %v278_v21 = vpop.f32.mrb[1].mxu0 }
 0x113   :  { %v148_v22 = vmax.f32 %v145_v20, 0.0 }
 0x115   :  { %296 = vmatmul.mubr.msk.f32.vlgmr.msra.gmra.mrb[0].mxu1 %vm164_vm5, %v148_v22 }
 0x1e8   :  { %v234_v24 = vpop.f32.mrb[0].mxu1 }
 0x1e9   :  { %v235_v25 = vadd.f32 %v258_v23, %v234_v24  ;;  %v297_v26 = vpop.f32.mrb[1].mxu1 }
 0x1eb   :  { %238 = vst [vmem:[#allocation8] sm:$0xff] %v235_v25 }
 0x1ec   :  { %401 = shalt.err (!%p398_p0)
}
 0x1ed   :  { %s402_s11 = scalar_lea.hbm %s523_s5, 128 }
 0x1ee   :  { %p403_p1 = scmp.ne.s32.totalorder %s523_s5, %s402_s11  ;;  %p406_p2 = scmp.lt.u32.totalorder %s402_s11, %s523_s5 }
 0x1f0   :  { %p408_p3 = pnand %p406_p2, %p403_p1 }
 0x1f2   :  { %411 = shalt.err (!%p408_p3)
}
 0x1f3   :  { %248 = dma.vmem_to_hbm [thread:$0]  %s246_s8, 128, %s523_s5, [#allocation4]  }
 0x1f4   :  { %416 = dma.done.wait [#allocation4], 128  }
 0x1f5   :  { %417 = vsyncadd [#allocation4], 4294967168 }
 0x1f6   :  { %252 = vsyncpa [#allocation3], 1 }
 0x1f7   :  { %253 = vsyncpa [#allocation6], 1 }
 0x1f8   :  { %254 = vsyncpa [#allocation4], 1 }

</bundles_post_ra>
